<compile_context>
chip_gen: v5e
topology: v5e:2x2
jax: 0.10.0
libtpu: 0.0.40
codegen_flags: <defaults>
</compile_context>

<pallas_src>
import functools

import jax
import jax.numpy as jnp
import numpy as np
from jax.experimental import pallas as pl
from jax.experimental.pallas import tpu as pltpu


# ----------------------------------------------------------------------------
# Kernel 1: fused pad + 3x3 / stride-2 convolution (with_conv=True path).
# ----------------------------------------------------------------------------
def _conv_down_kernel(x_ref, halo_ref, wa_ref, wb_ref, b_ref, o_ref, *, TH, Wo, C):
    """One (batch, row-tile) step.

    x_ref:    (1, 2*TH, Wo, 2C)  column-pair packed input rows [2*i*TH, 2*(i+1)*TH)
    halo_ref: (1, 2,    Wo, 2C)  packed rows starting at 2*(i+1)*TH (clamped in-bounds)
    wa_ref:   (3, 2C, C)         taps (ky, kx=0) and (ky, kx=1) stacked along K
    wb_ref:   (3, 2C, C)         tap  (ky, kx=2) in the top half, zeros below
    b_ref:    (1, C)             bias (f32)
    o_ref:    (1, TH, Wo, C)     output rows [i*TH, (i+1)*TH)
    """
    C2 = 2 * C
    M = TH * Wo
    f32 = jnp.float32

    i = pl.program_id(1)
    is_last = i == pl.num_programs(1) - 1

    xm = x_ref[0]                               # (2*TH, Wo, 2C)
    xr = xm.reshape(TH, 2, Wo, C2)              # split row pairs (free: leading dims)
    r0 = xr[:, 0]                               # padded rows 2*ho       (ky = 0)
    r1 = xr[:, 1]                               # padded rows 2*ho + 1   (ky = 1)

    # ky = 2 needs padded rows 2*ho + 2: shift r0 up by one row and append the halo
    # row; for the last row tile that row is the bottom zero-pad row -> mask to 0.
    keep = jnp.where(is_last, 0.0, 1.0).astype(xm.dtype)
    hrow = halo_ref[0, 0] * keep                # (Wo, 2C)
    if TH > 1:
        r2 = jnp.concatenate([r0[1:], hrow[None]], axis=0)
    else:
        r2 = hrow[None]

    # Right zero-pad column (padded col index W) as an extra zero pair.
    zero_pair = jnp.zeros((TH, 1, C2), dtype=xm.dtype)

    acc = jnp.zeros((M, C), dtype=f32)          # f32 accumulator
    for ky, slab in enumerate((r0, r1, r2)):
        # kx = 0 and kx = 1: both columns of pair `wo` -> single K = 2C matmul.
        acc += jnp.dot(slab.reshape(M, C2), wa_ref[ky],
                       preferred_element_type=f32)
        # kx = 2: first column of pair `wo + 1` (zero pair past the right edge).
        shifted = jnp.concatenate([slab[:, 1:, :], zero_pair], axis=1)
        acc += jnp.dot(shifted.reshape(M, C2), wb_ref[ky],
                       preferred_element_type=f32)

    acc += b_ref[...].astype(f32)               # single hoisted broadcast bias add
    # TODO(synk): for C < 128 the (Wo, C) store block is not lane-dense; packing the
    # row into lanes would need an in-kernel (TH*Wo,C)->(TH,Wo*C) relayout.
    o_ref[0] = acc.reshape(TH, Wo, C).astype(o_ref.dtype)


# ----------------------------------------------------------------------------
# Kernel 2: 2x2 / stride-2 average pooling (with_conv=False path).
# ----------------------------------------------------------------------------
def _avgpool_kernel(x_ref, o_ref, *, TH, Wo, C):
    xm = x_ref[0].astype(jnp.float32)           # (2*TH, Wo, 2C)
    xr = xm.reshape(TH, 2, Wo, 2 * C)
    s = xr[:, 0] + xr[:, 1]                     # sum over the two window rows
    o = 0.25 * (s[:, :, :C] + s[:, :, C:])      # sum over the two window columns
    o_ref[0] = o.astype(o_ref.dtype)


# ----------------------------------------------------------------------------
# Tiling / wrappers
# ----------------------------------------------------------------------------
def _pick_row_tile(Ho, Wo, C, itemsize, target_bytes=4 * 1024 * 1024):
    """Largest divisor of Ho whose (2*TH, Wo, 2C) input block stays under ~4 MiB.

    Conservative across generations: double-buffered in/out blocks plus resident
    weights stay well inside the 48 MiB VMEM limit set below (v7x has only 64 MiB).
    """
    per_row = 4 * Wo * C * itemsize             # input-block bytes per output row
    cap = max(1, target_bytes // per_row)
    th = 1
    for d in range(1, Ho + 1):
        if Ho % d == 0 and d <= cap:
            th = d
    return th


_COMPILER_PARAMS = pltpu.CompilerParams(
    dimension_semantics=("parallel", "parallel"),   # batch x row-tiles: megacore-friendly
    vmem_limit_bytes=48 * 1024 * 1024,
)


def _conv_downsample(x_nhwc, w_oihw, bias):
    N, H, W, C = x_nhwc.shape
    Ho, Wo = H // 2, W // 2
    cdt = jnp.bfloat16                                   # MXU operand dtype (f32 accum)

    # Free row-major reshape: lane-pack the two columns of every stride-2 window.
    xpk = x_nhwc.astype(cdt).reshape(N, H, Wo, 2 * C)

    # (O,I,3,3) -> (3,3,I,O); fold the kx taps into the matmul K dimension.
    w_hwio = jnp.transpose(w_oihw, (2, 3, 1, 0)).astype(cdt)
    wa = jnp.stack([jnp.concatenate([w_hwio[ky, 0], w_hwio[ky, 1]], axis=0)
                    for ky in range(3)])                 # (3, 2C, C)
    wb = jnp.stack([jnp.concatenate([w_hwio[ky, 2], jnp.zeros((C, C), cdt)], axis=0)
                    for ky in range(3)])                 # (3, 2C, C)
    b2 = bias.reshape(1, C).astype(jnp.float32)

    TH = _pick_row_tile(Ho, Wo, C, xpk.dtype.itemsize)
    nT = Ho // TH
    kern = functools.partial(_conv_down_kernel, TH=TH, Wo=Wo, C=C)

    out = pl.pallas_call(
        kern,
        out_shape=jax.ShapeDtypeStruct((N, Ho, Wo, C), x_nhwc.dtype),
        grid=(N, nT),
        in_specs=[
            # Main row tile: raw rows [2*i*TH, 2*(i+1)*TH).
            pl.BlockSpec((1, 2 * TH, Wo, 2 * C), lambda n, i: (n, i, 0, 0)),
            # 1-row halo (as a 2-row block): raw row 2*(i+1)*TH, clamped in-bounds
            # for the last tile (where it is the zero bottom pad, masked in-kernel).
            pl.BlockSpec((1, 2, Wo, 2 * C),
                         lambda n, i: (n, jnp.minimum((i + 1) * TH, Ho - 1), 0, 0)),
            # Constant index maps -> fetched once, kept resident across the grid.
            pl.BlockSpec((3, 2 * C, C), lambda n, i: (0, 0, 0)),
            pl.BlockSpec((3, 2 * C, C), lambda n, i: (0, 0, 0)),
            pl.BlockSpec((1, C), lambda n, i: (0, 0)),
        ],
        out_specs=pl.BlockSpec((1, TH, Wo, C), lambda n, i: (n, i, 0, 0)),
        compiler_params=_COMPILER_PARAMS,
    )(xpk, xpk, wa, wb, b2)
    return out


def _avgpool_downsample(x_nhwc):
    N, H, W, C = x_nhwc.shape
    Ho, Wo = H // 2, W // 2
    xpk = x_nhwc.reshape(N, H, Wo, 2 * C)                # free lane-pair packing
    TH = _pick_row_tile(Ho, Wo, C, xpk.dtype.itemsize)
    nT = Ho // TH
    kern = functools.partial(_avgpool_kernel, TH=TH, Wo=Wo, C=C)

    out = pl.pallas_call(
        kern,
        out_shape=jax.ShapeDtypeStruct((N, Ho, Wo, C), x_nhwc.dtype),
        grid=(N, nT),
        in_specs=[pl.BlockSpec((1, 2 * TH, Wo, 2 * C), lambda n, i: (n, i, 0, 0))],
        out_specs=pl.BlockSpec((1, TH, Wo, C), lambda n, i: (n, i, 0, 0)),
        compiler_params=_COMPILER_PARAMS,
    )(xpk)
    return out


def downsample_forward(x_nchw, *, with_conv, w_oihw=None, bias=None):
    """Forward pass of Downsample(in_channels, with_conv) for NCHW input."""
    N, C, H, W = x_nchw.shape
    if H % 2 or W % 2:
        # TODO(synk): odd spatial sizes (never hit by the SD-VAE) are not implemented.
        raise NotImplementedError("downsample_forward requires even H and W")
    x = jnp.transpose(x_nchw, (0, 2, 3, 1))              # NCHW -> NHWC (boundary glue)
    if with_conv:
        y = _conv_downsample(x, w_oihw, bias)
    else:
        y = _avgpool_downsample(x)
    return jnp.transpose(y, (0, 3, 1, 2))                # NHWC -> NCHW


if __name__ == "__main__":
    key = jax.random.PRNGKey(0)
    kx, kw, kb = jax.random.split(key, 3)

    N, C, H, W = 2, 4, 16, 16
    x = jax.random.normal(kx, (N, C, H, W), dtype=jnp.float32)

    # Deterministic Conv2d(C, C, kernel_size=3, stride=2, padding=0) params
    # (PyTorch-style uniform(-1/sqrt(fan_in), 1/sqrt(fan_in)) init, synthetic).
    fan_in = C * 3 * 3
    bound = 1.0 / np.sqrt(fan_in)
    w = jax.random.uniform(kw, (C, C, 3, 3), minval=-bound, maxval=bound,
                           dtype=jnp.float32)            # OIHW, like torch
    b = jax.random.uniform(kb, (C,), minval=-bound, maxval=bound,
                           dtype=jnp.float32)

    # --- with_conv=True path ------------------------------------------------
    fwd_conv = jax.jit(functools.partial(downsample_forward, with_conv=True))
    out = jax.block_until_ready(fwd_conv(x, w_oihw=w, bias=b))
    assert out.shape == (N, C, H // 2, W // 2), out.shape

    xpad = jnp.pad(x, ((0, 0), (0, 0), (0, 1), (0, 1)))  # pad = (0,1,0,1) like torch
    ref = jax.lax.conv_general_dilated(
        xpad, w, window_strides=(2, 2), padding="VALID",
        dimension_numbers=("NCHW", "OIHW", "NCHW"),
        precision=jax.lax.Precision.HIGHEST)
    ref = ref + b[None, :, None, None]
    # Loose tol covers the bf16 MXU operands (f32 accumulation).
    np.testing.assert_allclose(np.asarray(out), np.asarray(ref),
                               atol=2e-2, rtol=2e-2)

    # --- with_conv=False path (avg_pool2d 2x2 stride 2) ---------------------
    fwd_pool = jax.jit(functools.partial(downsample_forward, with_conv=False))
    out_pool = jax.block_until_ready(fwd_pool(x))
    assert out_pool.shape == (N, C, H // 2, W // 2), out_pool.shape
    ref_pool = x.reshape(N, C, H // 2, 2, W // 2, 2).mean(axis=(3, 5))
    np.testing.assert_allclose(np.asarray(out_pool), np.asarray(ref_pool),
                               atol=1e-5, rtol=1e-5)

    print("KERNEL_OK")
</pallas_src>

<mosaic_0001>
module attributes {stable_mosaic.version = 11 : i64} {
  func.func @_conv_down_kernel(%arg0: i32, %arg1: i32, %arg2: memref<1x16x8x8xbf16, #tpu.memory_space<vmem>>, %arg3: memref<1x2x8x8xbf16, #tpu.memory_space<vmem>>, %arg4: memref<3x8x4xbf16, #tpu.memory_space<vmem>>, %arg5: memref<3x8x4xbf16, #tpu.memory_space<vmem>>, %arg6: memref<1x4xf32, #tpu.memory_space<vmem>>, %arg7: memref<1x8x8x4xf32, #tpu.memory_space<vmem>>) attributes {dimension_semantics = [#tpu.dimension_semantics<parallel>, #tpu.dimension_semantics<parallel>], iteration_bounds = array<i64: 2, 1>, scalar_prefetch = 0 : i64, scratch_operands = 0 : i64, tpu.core_type = #tpu.core_type<tc>, window_params = [{transform_indices = @transform_0, window_bounds = array<i64: 1, 16, 8, 8>}, {transform_indices = @transform_1, window_bounds = array<i64: 1, 2, 8, 8>}, {pipeline_mode = #tpu.pipeline_mode<synchronous>, transform_indices = @transform_2, window_bounds = array<i64: 3, 8, 4>}, {pipeline_mode = #tpu.pipeline_mode<synchronous>, transform_indices = @transform_3, window_bounds = array<i64: 3, 8, 4>}, {pipeline_mode = #tpu.pipeline_mode<synchronous>, transform_indices = @transform_4, window_bounds = array<i64: 1, 4>}, {transform_indices = @transform_5, window_bounds = array<i64: 1, 8, 8, 4>}]} {
    %c0_i32 = arith.constant 0 : i32
    %0 = arith.cmpi eq, %arg1, %c0_i32 : i32
    %c0 = arith.constant 0 : index
    %c0_0 = arith.constant 0 : index
    %c0_1 = arith.constant 0 : index
    %c0_2 = arith.constant 0 : index
    %1 = vector.load %arg2[%c0, %c0_0, %c0_1, %c0_2] : memref<1x16x8x8xbf16, #tpu.memory_space<vmem>>, vector<1x16x8x8xbf16>
    %2 = vector.shape_cast %1 : vector<1x16x8x8xbf16> to vector<16x8x8xbf16>
    %3 = vector.shape_cast %2 : vector<16x8x8xbf16> to vector<8x2x8x8xbf16>
    %4 = vector.extract_strided_slice %3 {offsets = [0, 0, 0, 0], sizes = [8, 1, 8, 8], strides = [1, 1, 1, 1]} : vector<8x2x8x8xbf16> to vector<8x1x8x8xbf16>
    %5 = vector.shape_cast %4 : vector<8x1x8x8xbf16> to vector<8x8x8xbf16>
    %6 = vector.extract_strided_slice %3 {offsets = [0, 1, 0, 0], sizes = [8, 1, 8, 8], strides = [1, 1, 1, 1]} : vector<8x2x8x8xbf16> to vector<8x1x8x8xbf16>
    %7 = vector.shape_cast %6 : vector<8x1x8x8xbf16> to vector<8x8x8xbf16>
    %cst = arith.constant 0.000000e+00 : f32
    %cst_3 = arith.constant 1.000000e+00 : f32
    %8 = arith.select %0, %cst, %cst_3 : f32
    %9 = arith.truncf %8 : f32 to bf16
    %c0_4 = arith.constant 0 : index
    %c0_5 = arith.constant 0 : index
    %c0_6 = arith.constant 0 : index
    %c0_7 = arith.constant 0 : index
    %10 = vector.load %arg3[%c0_4, %c0_5, %c0_6, %c0_7] : memref<1x2x8x8xbf16, #tpu.memory_space<vmem>>, vector<1x1x8x8xbf16>
    %11 = vector.shape_cast %10 : vector<1x1x8x8xbf16> to vector<8x8xbf16>
    %12 = vector.broadcast %9 : bf16 to vector<8x8xbf16>
    %13 = arith.mulf %11, %12 : vector<8x8xbf16>
    %14 = vector.extract_strided_slice %5 {offsets = [1, 0, 0], sizes = [7, 8, 8], strides = [1, 1, 1]} : vector<8x8x8xbf16> to vector<7x8x8xbf16>
    %15 = vector.shape_cast %13 : vector<8x8xbf16> to vector<1x8x8xbf16>
    %16 = tpu.concatenate %14, %15 in 0 : vector<7x8x8xbf16>, vector<1x8x8xbf16> -> vector<8x8x8xbf16>
    %cst_8 = arith.constant 0.000000e+00 : bf16
    %17 = vector.broadcast %cst_8 : bf16 to vector<8x1x8xbf16>
    %cst_9 = arith.constant 0.000000e+00 : f32
    %18 = vector.broadcast %cst_9 : f32 to vector<64x4xf32>
    %19 = vector.shape_cast %5 : vector<8x8x8xbf16> to vector<64x8xbf16>
    %c0_10 = arith.constant 0 : index
    %c0_11 = arith.constant 0 : index
    %c0_12 = arith.constant 0 : index
    %20 = vector.load %arg4[%c0_10, %c0_11, %c0_12] : memref<3x8x4xbf16, #tpu.memory_space<vmem>>, vector<1x8x4xbf16>
    %21 = vector.shape_cast %20 : vector<1x8x4xbf16> to vector<8x4xbf16>
    %cst_13 = arith.constant dense<0.000000e+00> : vector<64x4xf32>
    %22 = tpu.matmul %19, %21, %cst_13 {dimension_numbers = #tpu.dot_dimension_numbers<[1], [0], [0], [1], [0, 0, 1, 1], [], []>} : vector<64x8xbf16>, vector<8x4xbf16>, vector<64x4xf32> -> vector<64x4xf32>
    %23 = arith.addf %18, %22 : vector<64x4xf32>
    %24 = vector.extract_strided_slice %5 {offsets = [0, 1, 0], sizes = [8, 7, 8], strides = [1, 1, 1]} : vector<8x8x8xbf16> to vector<8x7x8xbf16>
    %25 = tpu.concatenate %24, %17 in 1 : vector<8x7x8xbf16>, vector<8x1x8xbf16> -> vector<8x8x8xbf16>
    %26 = vector.shape_cast %25 : vector<8x8x8xbf16> to vector<64x8xbf16>
    %c0_14 = arith.constant 0 : index
    %c0_15 = arith.constant 0 : index
    %c0_16 = arith.constant 0 : index
    %27 = vector.load %arg5[%c0_14, %c0_15, %c0_16] : memref<3x8x4xbf16, #tpu.memory_space<vmem>>, vector<1x8x4xbf16>
    %28 = vector.shape_cast %27 : vector<1x8x4xbf16> to vector<8x4xbf16>
    %cst_17 = arith.constant dense<0.000000e+00> : vector<64x4xf32>
    %29 = tpu.matmul %26, %28, %cst_17 {dimension_numbers = #tpu.dot_dimension_numbers<[1], [0], [0], [1], [0, 0, 1, 1], [], []>} : vector<64x8xbf16>, vector<8x4xbf16>, vector<64x4xf32> -> vector<64x4xf32>
    %30 = arith.addf %23, %29 : vector<64x4xf32>
    %31 = vector.shape_cast %7 : vector<8x8x8xbf16> to vector<64x8xbf16>
    %c1 = arith.constant 1 : index
    %c0_18 = arith.constant 0 : index
    %c0_19 = arith.constant 0 : index
    %32 = vector.load %arg4[%c1, %c0_18, %c0_19] : memref<3x8x4xbf16, #tpu.memory_space<vmem>>, vector<1x8x4xbf16>
    %33 = vector.shape_cast %32 : vector<1x8x4xbf16> to vector<8x4xbf16>
    %cst_20 = arith.constant dense<0.000000e+00> : vector<64x4xf32>
    %34 = tpu.matmul %31, %33, %cst_20 {dimension_numbers = #tpu.dot_dimension_numbers<[1], [0], [0], [1], [0, 0, 1, 1], [], []>} : vector<64x8xbf16>, vector<8x4xbf16>, vector<64x4xf32> -> vector<64x4xf32>
    %35 = arith.addf %30, %34 : vector<64x4xf32>
    %36 = vector.extract_strided_slice %7 {offsets = [0, 1, 0], sizes = [8, 7, 8], strides = [1, 1, 1]} : vector<8x8x8xbf16> to vector<8x7x8xbf16>
    %37 = tpu.concatenate %36, %17 in 1 : vector<8x7x8xbf16>, vector<8x1x8xbf16> -> vector<8x8x8xbf16>
    %38 = vector.shape_cast %37 : vector<8x8x8xbf16> to vector<64x8xbf16>
    %c1_21 = arith.constant 1 : index
    %c0_22 = arith.constant 0 : index
    %c0_23 = arith.constant 0 : index
    %39 = vector.load %arg5[%c1_21, %c0_22, %c0_23] : memref<3x8x4xbf16, #tpu.memory_space<vmem>>, vector<1x8x4xbf16>
    %40 = vector.shape_cast %39 : vector<1x8x4xbf16> to vector<8x4xbf16>
    %cst_24 = arith.constant dense<0.000000e+00> : vector<64x4xf32>
    %41 = tpu.matmul %38, %40, %cst_24 {dimension_numbers = #tpu.dot_dimension_numbers<[1], [0], [0], [1], [0, 0, 1, 1], [], []>} : vector<64x8xbf16>, vector<8x4xbf16>, vector<64x4xf32> -> vector<64x4xf32>
    %42 = arith.addf %35, %41 : vector<64x4xf32>
    %43 = vector.shape_cast %16 : vector<8x8x8xbf16> to vector<64x8xbf16>
    %c2 = arith.constant 2 : index
    %c0_25 = arith.constant 0 : index
    %c0_26 = arith.constant 0 : index
    %44 = vector.load %arg4[%c2, %c0_25, %c0_26] : memref<3x8x4xbf16, #tpu.memory_space<vmem>>, vector<1x8x4xbf16>
    %45 = vector.shape_cast %44 : vector<1x8x4xbf16> to vector<8x4xbf16>
    %cst_27 = arith.constant dense<0.000000e+00> : vector<64x4xf32>
    %46 = tpu.matmul %43, %45, %cst_27 {dimension_numbers = #tpu.dot_dimension_numbers<[1], [0], [0], [1], [0, 0, 1, 1], [], []>} : vector<64x8xbf16>, vector<8x4xbf16>, vector<64x4xf32> -> vector<64x4xf32>
    %47 = arith.addf %42, %46 : vector<64x4xf32>
    %48 = vector.extract_strided_slice %16 {offsets = [0, 1, 0], sizes = [8, 7, 8], strides = [1, 1, 1]} : vector<8x8x8xbf16> to vector<8x7x8xbf16>
    %49 = tpu.concatenate %48, %17 in 1 : vector<8x7x8xbf16>, vector<8x1x8xbf16> -> vector<8x8x8xbf16>
    %50 = vector.shape_cast %49 : vector<8x8x8xbf16> to vector<64x8xbf16>
    %c2_28 = arith.constant 2 : index
    %c0_29 = arith.constant 0 : index
    %c0_30 = arith.constant 0 : index
    %51 = vector.load %arg5[%c2_28, %c0_29, %c0_30] : memref<3x8x4xbf16, #tpu.memory_space<vmem>>, vector<1x8x4xbf16>
    %52 = vector.shape_cast %51 : vector<1x8x4xbf16> to vector<8x4xbf16>
    %cst_31 = arith.constant dense<0.000000e+00> : vector<64x4xf32>
    %53 = tpu.matmul %50, %52, %cst_31 {dimension_numbers = #tpu.dot_dimension_numbers<[1], [0], [0], [1], [0, 0, 1, 1], [], []>} : vector<64x8xbf16>, vector<8x4xbf16>, vector<64x4xf32> -> vector<64x4xf32>
    %54 = arith.addf %47, %53 : vector<64x4xf32>
    %c0_32 = arith.constant 0 : index
    %c0_33 = arith.constant 0 : index
    %55 = vector.load %arg6[%c0_32, %c0_33] : memref<1x4xf32, #tpu.memory_space<vmem>>, vector<1x4xf32>
    %56 = vector.broadcast %55 : vector<1x4xf32> to vector<64x4xf32>
    %57 = arith.addf %54, %56 : vector<64x4xf32>
    %58 = vector.shape_cast %57 : vector<64x4xf32> to vector<8x8x4xf32>
    %c0_34 = arith.constant 0 : index
    %c0_35 = arith.constant 0 : index
    %c0_36 = arith.constant 0 : index
    %c0_37 = arith.constant 0 : index
    %59 = vector.load %arg7[%c0_34, %c0_35, %c0_36, %c0_37] : memref<1x8x8x4xf32, #tpu.memory_space<vmem>>, vector<1x8x8x4xf32>
    %60 = vector.shape_cast %59 : vector<1x8x8x4xf32> to vector<8x8x4xf32>
    %61 = vector.shape_cast %58 : vector<8x8x4xf32> to vector<1x8x8x4xf32>
    tpu.vector_store %arg7[%c0_34, %c0_35, %c0_36, %c0_37], %61 {strides = array<i32>} : memref<1x8x8x4xf32, #tpu.memory_space<vmem>>, vector<1x8x8x4xf32>,
    return
  }
  func.func @transform_0(%arg0: i32, %arg1: i32) -> (i32, i32, i32, i32) {
    %c0_i32 = arith.constant 0 : i32
    %c0_i32_0 = arith.constant 0 : i32
    %c0_i32_1 = arith.constant 0 : i32
    return %arg0, %arg1, %c0_i32, %c0_i32_0 : i32, i32, i32, i32
  }
  func.func @transform_1(%arg0: i32, %arg1: i32) -> (i32, i32, i32, i32) {
    %c1_i32 = arith.constant 1 : i32
    %0 = arith.addi %arg1, %c1_i32 : i32
    %c8_i32 = arith.constant 8 : i32
    %1 = arith.muli %0, %c8_i32 : i32
    %c7_i32 = arith.constant 7 : i32
    %2 = arith.minsi %1, %c7_i32 : i32
    %c0_i32 = arith.constant 0 : i32
    %c0_i32_0 = arith.constant 0 : i32
    %c0_i32_1 = arith.constant 0 : i32
    return %arg0, %2, %c0_i32, %c0_i32_0 : i32, i32, i32, i32
  }
  func.func @transform_2(%arg0: i32, %arg1: i32) -> (i32, i32, i32) {
    %c0_i32 = arith.constant 0 : i32
    %c0_i32_0 = arith.constant 0 : i32
    %c0_i32_1 = arith.constant 0 : i32
    %c0_i32_2 = arith.constant 0 : i32
    return %c0_i32, %c0_i32_0, %c0_i32_1 : i32, i32, i32
  }
  func.func @transform_3(%arg0: i32, %arg1: i32) -> (i32, i32, i32) {
    %c0_i32 = arith.constant 0 : i32
    %c0_i32_0 = arith.constant 0 : i32
    %c0_i32_1 = arith.constant 0 : i32
    %c0_i32_2 = arith.constant 0 : i32
    return %c0_i32, %c0_i32_0, %c0_i32_1 : i32, i32, i32
  }
  func.func @transform_4(%arg0: i32, %arg1: i32) -> (i32, i32) {
    %c0_i32 = arith.constant 0 : i32
    %c0_i32_0 = arith.constant 0 : i32
    %c0_i32_1 = arith.constant 0 : i32
    return %c0_i32, %c0_i32_0 : i32, i32
  }
  func.func @transform_5(%arg0: i32, %arg1: i32) -> (i32, i32, i32, i32) {
    %c0_i32 = arith.constant 0 : i32
    %c0_i32_0 = arith.constant 0 : i32
    %c0_i32_1 = arith.constant 0 : i32
    return %arg0, %arg1, %c0_i32, %c0_i32_0 : i32, i32, i32, i32
  }
}

</mosaic_0001>

<bundles_post_ra>
// kernel: downsample_forward.1
= control target key start
LH: loop header
LB: loop body
LE: loop exit
PB: predicated region body
PF: predicated region fallthrough
CT: control target
= control target key end

     0   :  { %s1233_s18 = smov 0   ;;  %s1235_s19 = smov 0   ;;  %s1533_s0 = inlined_call_operand.vmem [shape: bf16[2,16,8,8], index: 0, kind: input, shape index: {}, may-alias: {0,1}]   ;;  %s1534_s1 = inlined_call_operand.vmem [shape: bf16[2,16,8,8], index: 1, kind: input, shape index: {}, may-alias: {0,1}]   ;;  %s1535_s2 = inlined_call_operand.vmem [shape: bf16[3,8,4], index: 2, kind: input, shape index: {}]   ;;  %s1536_s3 = inlined_call_operand.vmem [shape: bf16[3,8,4], index: 3, kind: input, shape index: {}]   ;;  %s1537_s4 = inlined_call_operand.vmem [shape: f32[1,4], index: 4, kind: input, shape index: {}]   ;;  %s1538_s5 = inlined_call_operand.vmem [shape: f32[2,8,8,4], index: 5, kind: output, shape index: {}]  }
   0x1   :  { %s1237_s20 = smov 0  }
   0x2 LB: > { %s27_s21 = sadd.s32 1, %s1196_s19  ;;  %p1069_p0 = scmp.ge.s32.totalorder %s1200_s20, 1  ;;  %s1200_s20 = sphi %s1237_s20, %s15_s20   ;;  %s1196_s19 = sphi %s1235_s19, %s1542_s19   ;;  %s1192_s18 = sphi %s1233_s18, %s1541_s18  }
   0x3   : > { %p29_p1 = scmp.ge.s32.totalorder %s27_s21, 2  ;;  %p241_p2 = scmp.lt.s32.totalorder %s1200_s20, 3 }
   0x5   : > { %s1544_s21 = smov (%p29_p1, %s27_s21), 0  ;;  %p242_p3 = pnand %p1069_p0, %p241_p2 }
   0x6   : > { %p291_p4 = scmp.lt.s32.totalorder (!%p242_p3), %s1192_s18, 1 }
   0x7   : > { %245 = sbr.rel (%p242_p3) target bundleno = 263 (0x107), region = 40 }
   0xc   : > { %v366_v0 = vld [vmem:[%s1535_s2] sm:$0xf]  ;;  %vm455_vm0 = vcmask 1043456   ;;  %v1084_v3 = vld [vmem:[%s1535_s2 + $0x4] sm:$0xf]  ;;  %s1546_s18 = smov (!%p291_p4, %s1192_s18), 1 }
   0xd   : > { %v550_v1 = vsel %vm455_vm0, %v366_v0, 0  ;;  %v466_v2 = vld [vmem:[%s1536_s3] sm:$0xf]  ;;  %v616_v5 = vsel %vm455_vm0, %v1084_v3, 0  ;;  %v1089_v6 = vld [vmem:[%s1536_s3 + $0x4] sm:$0xf] }
   0xe   : > { %1151 = vmatpush.bf16.msra.mxu3 %v550_v1  ;;  %v502_v4 = vsel %vm455_vm0, %v466_v2, 0  ;;  %559 = vmatpush.bf16.msra.mxu1 %v550_v1  ;;  %v770_v7 = vsel %vm455_vm0, %v1089_v6, 0  ;;  %v1094_v8 = vld [vmem:[%s1535_s2 + $0x8] sm:$0xf]  ;;  %s1273_s9 = sshll.u32 %s1546_s18, 6  ;;  %vm487_vm2 = vcmask 64512  }
   0xf   : > { %1150 = vmatpush.bf16.msra.mxu2 %v502_v4  ;;  %511 = vmatpush.bf16.msra.mxu0 %v502_v4  ;;  %v1099_v9 = vld [vmem:[%s1536_s3 + $0x8] sm:$0xf]  ;;  %v830_v10 = vsel %vm455_vm0, %v1094_v8, 0  ;;  %s1281_s12 = scalar_lea.vmem %s1533_s0, %s1273_s9  ;;  %vm456_vm1 = vsmask.f32 3328  ;;  %s1108_s13 = sadd.s32 56, %s1273_s9 }
  0x10   : > { %v900_v11 = vsel %vm455_vm0, %v1099_v9, 0  ;;  %v1284_v12 = vld [vmem:[%s1281_s12 + $0x20] sm:$0xff]   ;;  %v1287_v13 = vld [vmem:[%s1281_s12 + $0x28] sm:$0xff]   ;;  %v1298_v18 = vld [vmem:[%s1281_s12 + $0x30] sm:$0xff]   ;;  %s312_s16 = scalar_lea.vmem %s1534_s1, %s1108_s13  ;;  %s1492_s24 = scalar_lea.vmem %s1538_s5, %s1273_s9  ;;  %vm951_vm4 = vcmask 31744  }
  0x11   : > { %v1111_v14 = vld [vmem:[%s1281_s12] sm:$0xff]   ;;  %v1291_v15 = vunpack.c.l.b16 %v1284_v12  ;;  %v1294_v16 = vunpack.c.l.b16 %v1287_v13  ;;  %v1143_v17 = vld [vmem:[%s1281_s12 + $0x8] sm:$0xff]   ;;  %v1301_v19 = vld [vmem:[%s1281_s12 + $0x38] sm:$0xff]   ;;  %v1312_v25 = vunpack.c.l.b16 %v1298_v18 }
  0x12   : > { %779 = vmatpush.bf16.msrb.mxu3 %v770_v7  ;;  %909 = vmatpush.bf16.msrb.mxu1 %v900_v11  ;;  %v1112_v20 = vunpack.c.l.b16 %v1111_v14  ;;  %v1303_v21 = vunpack.c.l.b16 %v1143_v17  ;;  %v1318_v29 = vunpack.c.l.b16 %v1301_v19  ;;  %v1323_v38 = vld [vmem:[%s1281_s12 + $0x10] sm:$0xff]   ;;  %v1145_v39 = vld [vmem:[%s1281_s12 + $0x18] sm:$0xff]   ;;  %v1326_v42 = vunpack.c.h.b16 %v1111_v14  ;;  %vm1330_vm3 = vmand %vm455_vm0, %vm456_vm1 }
  0x13   : > { %625 = vmatpush.bf16.msrb.mxu2 %v616_v5  ;;  %839 = vmatpush.bf16.msrb.mxu0 %v830_v10  ;;  %v535_v22 = vpack.c.b16 %v1294_v16, %v1291_v15  ;;  %v387_v23 = vpack.c.b16 %v1291_v15, %v1291_v15  ;;  %v388_v24 = vpack.c.b16 %v1294_v16, %v1294_v16  ;;  %v1339_v50 = vunpack.c.l.b16 %v1323_v38 }
  0x14   : > { %v383_v26 = vpack.c.b16 %v1112_v20, %v1112_v20  ;;  %v384_v27 = vpack.c.b16 %v1303_v21, %v1303_v21  ;;  %v533_v28 = vpack.c.b16 %v1303_v21, %v1112_v20  ;;  %v389_v46 = vpack.c.b16 %v1312_v25, %v1312_v25 }
  0x15   : > { %1082 = vmatmul.msk.bf16.vlgmr.msra.gmra.mxu3 %vm487_vm2, %v535_v22  ;;  %v420_v30 = vshrl.u32 %v387_v23, 16  ;;  %v422_v31 = vshll.u32 %v387_v23, 16  ;;  %v427_v32 = vshrl.u32 %v388_v24, 16  ;;  %v429_v33 = vshll.u32 %v388_v24, 16 }
  0x16   : > { %v392_v34 = vshrl.u32 %v383_v26, 16  ;;  %v394_v35 = vshll.u32 %v383_v26, 16  ;;  %v399_v36 = vshrl.u32 %v384_v27, 16  ;;  %v401_v37 = vshll.u32 %v384_v27, 16  ;;  %1080 = vmatmul.msk.bf16.vlgmr.msra.gmra.mxu1 %vm487_vm2, %v533_v28 }
  0x17   : > { %v424_v40 = vrot.slane %v422_v31, 1  ;;  %v431_v41 = vrot.slane %v429_v33, 1  ;;  %v390_v47 = vpack.c.b16 %v1318_v29, %v1318_v29  ;;  %v1341_v51 = vunpack.c.l.b16 %v1145_v39 }
  0x18   : > { %v396_v44 = vrot.slane %v394_v35, 1  ;;  %v403_v45 = vrot.slane %v401_v37, 1  ;;  %v434_v54 = vshrl.u32 %v389_v46, 16  ;;  %v436_v55 = vshll.u32 %v389_v46, 16 }
  0x19   : > { %v425_v48 = vor.u32 %v424_v40, %v420_v30  ;;  %v432_v49 = vor.u32 %v431_v41, %v427_v32  ;;  %v441_v58 = vshrl.u32 %v390_v47, 16  ;;  %v443_v59 = vshll.u32 %v390_v47, 16 }
  0x1a   : > { %v397_v52 = vor.u32 %v396_v44, %v392_v34  ;;  %v404_v53 = vor.u32 %v403_v45, %v399_v36  ;;  %v438_v2 = vrot.slane %v436_v55, 1  ;;  %v385_v5 = vpack.c.b16 %v1339_v50, %v1339_v50 }
  0x1b   : > { %v462_v56 = vsel %vm1330_vm3, %v425_v48, 0  ;;  %v463_v57 = vsel %vm1330_vm3, %v432_v49, 0  ;;  %v445_v3 = vrot.slane %v443_v59, 1  ;;  %v386_v6 = vpack.c.b16 %v1341_v51, %v1341_v51 }
  0x1c   : > { %v1347_v60 = vunpack.c.l.b16 %v462_v56  ;;  %v1349_v61 = vunpack.c.l.b16 %v463_v57  ;;  %v458_v62 = vsel %vm1330_vm3, %v397_v52, 0  ;;  %v459_v63 = vsel %vm1330_vm3, %v404_v53, 0 }
  0x1d   : > { %v475_v0 = vunpack.c.l.b16 %v458_v62  ;;  %v1355_v1 = vunpack.c.l.b16 %v459_v63  ;;  %v536_v8 = vpack.c.b16 %v1318_v29, %v1312_v25  ;;  %v1366_v9 = vunpack.c.h.b16 %v1143_v17 }
  0x1e   : > { %v485_v4 = vpack.c.b16 %v1349_v61, %v1347_v60  ;;  %v406_v10 = vshrl.u32 %v385_v5, 16  ;;  %v408_v11 = vshll.u32 %v385_v5, 16  ;;  %v413_v14 = vshrl.u32 %v386_v6, 16 }
  0x1f   : > { %v483_v7 = vpack.c.b16 %v1355_v1, %v475_v0  ;;  %v415_v20 = vshll.u32 %v386_v6, 16  ;;  %v439_v22 = vor.u32 %v438_v2, %v434_v54  ;;  %v446_v23 = vor.u32 %v445_v3, %v441_v58 }
  0x20   : > { %1078 = vmatmul.msk.bf16.vlgmr.msra.gmra.mxu2 %vm487_vm2, %v485_v4  ;;  %v655_v24 = vpack.c.b16 %v1326_v42, %v1326_v42  ;;  %v656_v26 = vpack.c.b16 %v1366_v9, %v1366_v9  ;;  %v410_v27 = vrot.slane %v408_v11, 1  ;;  %v534_v17 = vpack.c.b16 %v1341_v51, %v1339_v50 }
  0x21   : > { %1076 = vmatmul.msk.bf16.vlgmr.msra.gmra.mxu0 %vm487_vm2, %v483_v7  ;;  %v417_v28 = vrot.slane %v415_v20, 1  ;;  %v464_v36 = vsel %vm1330_vm3, %v439_v22, 0  ;;  %v465_v37 = vsel %vm1330_vm3, %v446_v23, 0  ;;  %v1387_v46 = vunpack.c.h.b16 %v1323_v38 }
  0x22   : > { %v664_v30 = vshrl.u32 %v655_v24, 16  ;;  %v666_v31 = vshll.u32 %v655_v24, 16  ;;  %v671_v32 = vshrl.u32 %v656_v26, 16  ;;  %v673_v33 = vshll.u32 %v656_v26, 16 }
  0x23   : > { %v411_v34 = vor.u32 %v410_v27, %v406_v10  ;;  %v418_v35 = vor.u32 %v417_v28, %v413_v14  ;;  %v1389_v47 = vunpack.c.h.b16 %v1145_v39  ;;  %v1391_v52 = vunpack.c.l.b16 %v464_v36 }
  0x24   : > { %v668_v40 = vrot.slane %v666_v31, 1  ;;  %v675_v41 = vrot.slane %v673_v33, 1  ;;  %v1393_v53 = vunpack.c.l.b16 %v465_v37  ;;  %v657_v38 = vpack.c.b16 %v1387_v46, %v1387_v46 }
  0x25   : > { %1083 = vmatmul.msk.bf16.gmra.mxu3 %vm487_vm2, %v536_v8  ;;  %v460_v44 = vsel %vm1330_vm3, %v411_v34, 0  ;;  %v461_v45 = vsel %vm1330_vm3, %v418_v35, 0  ;;  %v658_v39 = vpack.c.b16 %v1389_v47, %v1389_v47  ;;  %v1410_v10 = vunpack.c.h.b16 %v1284_v12 }
  0x26   : > { %1081 = vmatmul.msk.bf16.gmra.mxu1 %vm487_vm2, %v534_v17  ;;  %v669_v48 = vor.u32 %v668_v40, %v664_v30  ;;  %v676_v49 = vor.u32 %v675_v41, %v671_v32  ;;  %v477_v54 = vunpack.c.l.b16 %v460_v44  ;;  %v478_v55 = vunpack.c.l.b16 %v461_v45  ;;  %v357_v30 = vld [vmem:[%s312_s16] sm:$0xf] }
  0x27   : > { %v486_v58 = vpack.c.b16 %v1393_v53, %v1391_v52  ;;  %v680_v0 = vshll.u32 %v657_v38, 16  ;;  %v687_v2 = vshll.u32 %v658_v39, 16  ;;  %v678_v5 = vshrl.u32 %v657_v38, 16 }
  0x28   : > { %v727_v56 = vsel %vm1330_vm3, %v669_v48, 0  ;;  %v728_v57 = vsel %vm1330_vm3, %v676_v49, 0  ;;  %v484_v59 = vpack.c.b16 %v478_v55, %v477_v54  ;;  %v883_v4 = vpack.c.b16 %v477_v54, %v1355_v1 }
  0x29   : > { %v745_v62 = vunpack.c.l.b16 %v727_v56  ;;  %v746_v63 = vunpack.c.l.b16 %v728_v57  ;;  %v682_v6 = vrot.slane %v680_v0, 1  ;;  %v685_v7 = vshrl.u32 %v658_v39, 16 }
  0x2a   : > { %v689_v8 = vrot.slane %v687_v2, 1  ;;  %v1413_v11 = vunpack.c.h.b16 %v1287_v13  ;;  %v659_v23 = vpack.c.b16 %v1410_v10, %v1410_v10  ;;  %v599_v13 = vpack.c.b16 %v1366_v9, %v1326_v42 }
  0x2b   : > { %v753_v3 = vpack.c.b16 %v746_v63, %v745_v62  ;;  %v683_v14 = vor.u32 %v682_v6, %v678_v5  ;;  %v813_v24 = vpack.c.b16 %v1339_v50, %v1303_v21  ;;  %v362_v31 = vunpack.c.l.bf16 %v357_v30 }
  0x2c   : > { %v690_v20 = vor.u32 %v689_v8, %v685_v7  ;;  %v660_v12 = vpack.c.b16 %v1413_v11, %v1413_v11  ;;  %v694_v28 = vshll.u32 %v659_v23, 16  ;;  %v1202_v32 = vmov 0.0  }
  0x2d   : > { %v729_v1 = vsel %vm1330_vm3, %v683_v14, 0  ;;  %v363_v33 = vunpack.c.l.bf16 %v1202_v32  ;;  %v884_v35 = vpack.c.b16 %v1347_v60, %v478_v55  ;;  %v692_v36 = vshrl.u32 %v659_v23, 16 }
  0x2e   : > { %v730_v22 = vsel %vm1330_vm3, %v690_v20, 0  ;;  %v747_v26 = vunpack.c.l.b16 %v729_v1  ;;  %v701_v17 = vshll.u32 %v660_v12, 16  ;;  %v696_v42 = vrot.slane %v694_v28, 1 }
  0x2f   : > { %v748_v27 = vunpack.c.l.b16 %v730_v22  ;;  %v699_v9 = vshrl.u32 %v660_v12, 16  ;;  %v364_v21 = vmul.f32 %v363_v33, %v362_v31  ;;  %v1137_v40 = vunpack.c.h.b16 %v1298_v18 }
  0x30   : > { %1079 = vmatmul.msk.bf16.gmra.mxu2 %vm487_vm2, %v486_v58  ;;  %v703_v37 = vrot.slane %v701_v17, 1  ;;  %v1141_v41 = vunpack.c.h.b16 %v1301_v19  ;;  %v697_v44 = vor.u32 %v696_v42, %v692_v36  ;;  %v600_v57 = vpack.c.b16 %v1389_v47, %v1387_v46 }
  0x31   : > { %1077 = vmatmul.msk.bf16.gmra.mxu0 %vm487_vm2, %v484_v59  ;;  %v754_v34 = vpack.c.b16 %v748_v27, %v747_v26  ;;  %v365_v50 = vpack.c.bf16 %v364_v21, %v364_v21  ;;  %v661_v54 = vpack.c.b16 %v1137_v40, %v1137_v40  ;;  %v814_v18 = vpack.c.b16 %v1291_v15, %v1341_v51 }
  0x32   : > { %v704_v45 = vor.u32 %v703_v37, %v699_v9  ;;  %v731_v60 = vsel %vm1330_vm3, %v697_v44, 0  ;;  %v662_v55 = vpack.c.b16 %v1141_v41, %v1141_v41  ;;  %v885_v63 = vpack.c.b16 %v1391_v52, %v1349_v61 }
  0x33   : > { %v812_v48 = vunpack.c.l.b16 %v365_v50  ;;  %v749_v19 = vunpack.c.l.b16 %v731_v60  ;;  %v708_v39 = vshll.u32 %v661_v54, 16  ;;  %v706_v0 = vshrl.u32 %v661_v54, 16 }
  0x34   : > { %v732_v49 = vsel %vm1330_vm3, %v704_v45, 0  ;;  %v715_v58 = vshll.u32 %v662_v55, 16  ;;  %v601_v52 = vpack.c.b16 %v1413_v11, %v1410_v10  ;;  %v815_v8 = vpack.c.b16 %v1312_v25, %v1294_v16  ;;  %v1486_v45 = vld [vmem:[%s1537_s4] ss:$0 sm:$0xff] }
  0x35   : > { %1090 = vmatmul.msk.bf16.vlgmr.msrb.gmra.mxu3 %vm487_vm2, %v753_v3  ;;  %v869_v56 = vpack.c.b16 %v812_v48, %v812_v48  ;;  %v750_v38 = vunpack.c.l.b16 %v732_v49  ;;  %v710_v2 = vrot.slane %v708_v39, 1  ;;  %v713_v3 = vshrl.u32 %v662_v55, 16 }
  0x36   : > { %1100 = vmatmul.msk.bf16.vlgmr.msrb.gmra.mxu1 %vm487_vm2, %v883_v4  ;;  %v717_v46 = vrot.slane %v715_v58, 1  ;;  %v602_v43 = vpack.c.b16 %v1141_v41, %v1137_v40  ;;  %v816_v10 = vpack.c.b16 %v812_v48, %v1318_v29 }
  0x37   : > { %v873_v59 = vshll.u32 %v869_v56, 16  ;;  %v755_v62 = vpack.c.b16 %v750_v38, %v749_v19  ;;  %v871_v47 = vshrl.u32 %v869_v56, 16  ;;  %v711_v15 = vor.u32 %v710_v2, %v706_v0 }
  0x38   : > { %v718_v51 = vor.u32 %v717_v46, %v713_v3 }
  0x39   : > { %v875_v4 = vrot.slane %v873_v59, 1  ;;  %v733_v6 = vsel %vm1330_vm3, %v711_v15, 0 }
  0x3a   : > { %v734_v7 = vsel %vm1330_vm3, %v718_v51, 0  ;;  %v751_v14 = vunpack.c.l.b16 %v733_v6 }
  0x3b   : > { %v876_v5 = vor.u32 %v875_v4, %v871_v47  ;;  %v752_v20 = vunpack.c.l.b16 %v734_v7 }
  0x3d   : > { %v878_v61 = vsel %vm1330_vm3, %v876_v5, 0  ;;  %v756_v22 = vpack.c.b16 %v752_v20, %v751_v14 }
  0x3e   : > { %v882_v1 = vunpack.c.l.b16 %v878_v61 }
  0x40   : > { %1085 = vmatmul.msk.bf16.vlgmr.msrb.gmra.mxu2 %vm487_vm2, %v599_v13  ;;  %v886_v23 = vpack.c.b16 %v882_v1, %v1393_v53 }
  0x41   : > { %1095 = vmatmul.msk.bf16.vlgmr.msrb.gmra.mxu0 %vm487_vm2, %v813_v24 }
  0x45   : > { %1091 = vmatmul.msk.bf16.gmra.mxu3 %vm487_vm2, %v754_v34 }
  0x46   : > { %1101 = vmatmul.msk.bf16.gmra.mxu1 %vm487_vm2, %v884_v35 }
  0x50   : > { %1086 = vmatmul.msk.bf16.gmra.mxu2 %vm487_vm2, %v600_v57 }
  0x51   : > { %1096 = vmatmul.msk.bf16.gmra.mxu0 %vm487_vm2, %v814_v18 }
  0x55   : > { %1092 = vmatmul.msk.bf16.gmra.mxu3 %vm487_vm2, %v755_v62 }
  0x56   : > { %1102 = vmatmul.msk.bf16.gmra.mxu1 %vm487_vm2, %v885_v63 }
  0x60   : > { %1087 = vmatmul.msk.bf16.gmra.mxu2 %vm487_vm2, %v601_v52 }
  0x61   : > { %1097 = vmatmul.msk.bf16.gmra.mxu0 %vm487_vm2, %v815_v8 }
  0x65   : > { %1093 = vmatmul.msk.bf16.gmra.mxu3 %vm487_vm2, %v756_v22 }
  0x66   : > { %1103 = vmatmul.msk.bf16.gmra.mxu1 %vm487_vm2, %v886_v23 }
  0x70   : > { %1088 = vmatmul.msk.bf16.gmra.mxu2 %vm487_vm2, %v602_v43 }
  0x71   : > { %1098 = vmatmul.msk.bf16.gmra.mxu0 %vm487_vm2, %v816_v10 }
  0x93   : > { %v561_v16 = vpop.f32.mrf.mxu1 }
  0x98   : > { %v571_v25 = vpop.f32.mrf.mxu3 }
  0x9b   : > { %v563_v12 = vpop.f32.mrf.mxu1 }
  0x9e   : > { %v513_v11 = vpop.f32.mrf.mxu0 }
  0x9f   : > { %v562_v9 = vadd.f32 %v561_v16, %v513_v11 }
  0xa0   : > { %v1471_v13 = vpop.f32.mrf.mxu3 }
  0xa3   : > { %v523_v24 = vpop.f32.mrf.mxu2  ;;  %v566_v27 = vpop.f32.mrf.mxu1 }
  0xa4   : > { %v572_v14 = vadd.f32 %v571_v25, %v523_v24 }
  0xa6   : > { %v515_v26 = vpop.f32.mrf.mxu0 }
  0xa7   : > { %v564_v48 = vadd.f32 %v563_v12, %v515_v26 }
  0xa8   : > { %v1473_v53 = vpop.f32.mrf.mxu3 }
  0xab   : > { %v1475_v28 = vpop.f32.mrf.mxu2  ;;  %v568_v31 = vpop.f32.mrf.mxu1 }
  0xac   : > { %v574_v12 = vadd.f32 %v1471_v13, %v1475_v28 }
  0xae   : > { %v518_v17 = vpop.f32.mrf.mxu0 }
  0xaf   : > { %v567_v39 = vadd.f32 %v566_v27, %v518_v17 }
  0xb0   : > { %v1477_v30 = vpop.f32.mrf.mxu3 }
  0xb3   : > { %v1479_v29 = vpop.f32.mrf.mxu2  ;;  %v911_v35 = vpop.f32.mrf.mxu1 }
  0xb6   : > { %v520_v32 = vpop.f32.mrf.mxu0 }
  0xb7   : > { %v569_v4 = vadd.f32 %v568_v31, %v520_v32 }
  0xb8   : > { %v781_v33 = vpop.f32.mrf.mxu3 }
  0xbb   : > { %v1481_v34 = vpop.f32.mrf.mxu2  ;;  %v913_v50 = vpop.f32.mrf.mxu1 }
  0xbe   : > { %v841_v36 = vpop.f32.mrf.mxu0 }
  0xc0   : > { %v783_v42 = vpop.f32.mrf.mxu3 }
  0xc3   : > { %v627_v37 = vpop.f32.mrf.mxu2  ;;  %v916_v19 = vpop.f32.mrf.mxu1 }
  0xc4   : > { %v647_v21 = vadd.f32 %v627_v37, %v562_v9 }
  0xc6   : > { %v801_v40 = vadd.f32 %v781_v33, %v647_v21  ;;  %v843_v41 = vpop.f32.mrf.mxu0 }
  0xc8   : > { %v861_v44 = vadd.f32 %v841_v36, %v801_v40  ;;  %v786_v54 = vpop.f32.mrf.mxu3 }
  0xca   : > { %v931_v60 = vadd.f32 %v911_v35, %v861_v44  ;;  %v577_v35 = vadd.f32 %v1473_v53, %v1479_v29 }
  0xcb   : > { %v629_v49 = vpop.f32.mrf.mxu2  ;;  %v918_v47 = vpop.f32.mrf.mxu1 }
  0xcc   : > { %v943_v55 = vadd.f32 %v1486_v45, %v931_v60  ;;  %v648_v56 = vadd.f32 %v629_v49, %v564_v48 }
  0xce   : > { %952 = vst.msk [vmem:[%s1492_s24] sm:$0xff] %vm951_vm4, %v943_v55  ;;  %v802_v57 = vadd.f32 %v783_v42, %v648_v56  ;;  %v846_v18 = vpop.f32.mrf.mxu0 }
  0xd0   : > { %v862_v38 = vadd.f32 %v843_v41, %v802_v57  ;;  %v788_v0 = vpop.f32.mrf.mxu3  ;;  %v579_v41 = vadd.f32 %v1477_v30, %v1481_v34 }
  0xd2   : > { %v932_v58 = vadd.f32 %v913_v50, %v862_v38 }
  0xd3   : > { %v632_v59 = vpop.f32.mrf.mxu2  ;;  %v921_v1 = vpop.f32.mrf.mxu1 }
  0xd4   : > { %v944_v62 = vadd.f32 %v1486_v45, %v932_v58  ;;  %v649_v63 = vadd.f32 %v632_v59, %v567_v39 }
  0xd6   : > { %953 = vst.msk [vmem:[%s1492_s24 + $0x8] sm:$0xff] %vm951_vm4, %v944_v62  ;;  %v803_v2 = vadd.f32 %v786_v54, %v649_v63  ;;  %v848_v3 = vpop.f32.mrf.mxu0 }
  0xd8   : > { %v863_v46 = vadd.f32 %v846_v18, %v803_v2  ;;  %v791_v61 = vpop.f32.mrf.mxu3 }
  0xda   : > { %v933_v15 = vadd.f32 %v916_v19, %v863_v46 }
  0xdb   : > { %v634_v51 = vpop.f32.mrf.mxu2  ;;  %v923_v31 = vpop.f32.mrf.mxu1 }
  0xdc   : > { %v945_v5 = vadd.f32 %v1486_v45, %v933_v15  ;;  %v650_v6 = vadd.f32 %v634_v51, %v569_v4 }
  0xde   : > { %954 = vst.msk [vmem:[%s1492_s24 + $0x10] sm:$0xff] %vm951_vm4, %v945_v5  ;;  %v804_v7 = vadd.f32 %v788_v0, %v650_v6  ;;  %v851_v8 = vpop.f32.mrf.mxu0 }
  0xe0   : > { %v864_v52 = vadd.f32 %v848_v3, %v804_v7  ;;  %v793_v11 = vpop.f32.mrf.mxu3 }
  0xe2   : > { %v934_v20 = vadd.f32 %v918_v47, %v864_v52 }
  0xe3   : > { %v637_v22 = vpop.f32.mrf.mxu2  ;;  %v926_v50 = vpop.f32.mrf.mxu1 }
  0xe4   : > { %v946_v23 = vadd.f32 %v1486_v45, %v934_v20  ;;  %v651_v43 = vadd.f32 %v637_v22, %v572_v14 }
  0xe6   : > { %955 = vst.msk [vmem:[%s1492_s24 + $0x18] sm:$0xff] %vm951_vm4, %v946_v23  ;;  %v805_v10 = vadd.f32 %v791_v61, %v651_v43  ;;  %v853_v27 = vpop.f32.mrf.mxu0 }
  0xe8   : > { %v865_v16 = vadd.f32 %v851_v8, %v805_v10  ;;  %v796_v42 = vpop.f32.mrf.mxu3 }
  0xea   : > { %v935_v26 = vadd.f32 %v921_v1, %v865_v16 }
  0xeb   : > { %v639_v17 = vpop.f32.mrf.mxu2  ;;  %v928_v56 = vpop.f32.mrf.mxu1 }
  0xec   : > { %v947_v25 = vadd.f32 %v1486_v45, %v935_v26  ;;  %v652_v24 = vadd.f32 %v639_v17, %v574_v12 }
  0xee   : > { %956 = vst.msk [vmem:[%s1492_s24 + $0x20] sm:$0xff] %vm951_vm4, %v947_v25  ;;  %v806_v32 = vadd.f32 %v793_v11, %v652_v24  ;;  %v856_v37 = vpop.f32.mrf.mxu0 }
  0xf0   : > { %v866_v33 = vadd.f32 %v853_v27, %v806_v32  ;;  %v798_v60 = vpop.f32.mrf.mxu3 }
  0xf2   : > { %v936_v36 = vadd.f32 %v923_v31, %v866_v33 }
  0xf3   : > { %v642_v9 = vpop.f32.mrf.mxu2 }
  0xf4   : > { %v948_v13 = vadd.f32 %v1486_v45, %v936_v36  ;;  %v653_v28 = vadd.f32 %v642_v9, %v577_v35 }
  0xf6   : > { %957 = vst.msk [vmem:[%s1492_s24 + $0x28] sm:$0xff] %vm951_vm4, %v948_v13  ;;  %v807_v21 = vadd.f32 %v796_v42, %v653_v28  ;;  %v858_v54 = vpop.f32.mrf.mxu0 }
  0xf8   : > { %v867_v40 = vadd.f32 %v856_v37, %v807_v21 }
  0xfa   : > { %v937_v44 = vadd.f32 %v926_v50, %v867_v40 }
  0xfb   : > { %v644_v48 = vpop.f32.mrf.mxu2 }
  0xfc   : > { %v949_v53 = vadd.f32 %v1486_v45, %v937_v44  ;;  %v654_v29 = vadd.f32 %v644_v48, %v579_v41 }
  0xfe   : > { %958 = vst.msk [vmem:[%s1492_s24 + $0x30] sm:$0xff] %vm951_vm4, %v949_v53  ;;  %v808_v49 = vadd.f32 %v798_v60, %v654_v29 }
 0x100   : > { %v868_v55 = vadd.f32 %v858_v54, %v808_v49 }
 0x102   : > { %v938_v57 = vadd.f32 %v928_v56, %v868_v55 }
 0x104   : > { %v950_v18 = vadd.f32 %v1486_v45, %v938_v57 }
 0x106   : > { %959 = vst.msk [vmem:[%s1492_s24 + $0x38] sm:$0xff] %vm951_vm4, %v950_v18 }
 0x107 PF: > { %s15_s20 = sadd.s32 1, %s1200_s20   ;;  %s1541_s18 = smov %s1196_s19 }
 0x108   : > { %p12_p5 = scmp.ge.s32.totalorder %s15_s20, 4   ;;  %s1542_s19 = smov %s1544_s21 }
 0x10a   :  { %14 = sbr.rel (!%p12_p5) target bundleno = 2 (0x2), region = 77 }

</bundles_post_ra>
